<compile_context>
chip_gen: v5e
topology: v5e:2x2
jax: 0.10.0
libtpu: 0.0.40
codegen_flags: <defaults>
</compile_context>

<pallas_src>
import jax
import jax.numpy as jnp
from jax.experimental import pallas as pl
from jax.experimental.pallas import tpu as pltpu


_VPU_MAC_MAX_K = 8                         # below this, VPU MACs beat MXU push/pop latency
_SINGLE_BLOCK_MAX_BYTES = 2 * 1024 * 1024  # single-VMEM-block fast-path threshold


def pytorch_weight_to_compute_layout(weight):
    """One-time conversion of an nn.Linear weight (dim, num_class) -> (num_class, dim)."""
    return weight.T


def _round_up(v, m):
    return ((v + m - 1) // m) * m


# ---------------------------------------------------------------------------
# Single-block path: whole problem resident in VMEM, no grid at all.
# ---------------------------------------------------------------------------
def _single_block_kernel(x_ref, wt_ref, b_ref, o_ref):
    # x_ref: (M, K), wt_ref: (K, N), b_ref: (1, N) f32, o_ref: (M, N)
    x = x_ref[...]
    wt = wt_ref[...]
    b = b_ref[...]
    k_dim = x.shape[1]
    if k_dim <= _VPU_MAC_MAX_K:
        # Tiny contraction (e.g. num_class=2): unrolled broadcast multiply-adds
        # on the VPU.  K is a trace-time constant, so this is a static unroll.
        acc = jnp.zeros(o_ref.shape, jnp.float32) + b
        for k in range(k_dim):
            acc = acc + (x[:, k:k + 1].astype(jnp.float32)
                         * wt[k:k + 1, :].astype(jnp.float32))
        o_ref[...] = acc.astype(o_ref.dtype)
    else:
        acc = jnp.dot(x, wt, preferred_element_type=jnp.float32)
        o_ref[...] = (acc + b).astype(o_ref.dtype)


# ---------------------------------------------------------------------------
# Tiled MXU path, single K step: no accumulator scratch, no init/finalize.
# ---------------------------------------------------------------------------
def _tiled_linear_single_k_kernel(x_ref, wt_ref, b_ref, o_ref):
    acc = jnp.dot(x_ref[...], wt_ref[...], preferred_element_type=jnp.float32)
    o_ref[...] = (acc + b_ref[...]).astype(o_ref.dtype)


# ---------------------------------------------------------------------------
# Tiled MXU path, multi K step: (M, N, K) grid with f32 accumulator scratch.
# ---------------------------------------------------------------------------
def _tiled_linear_kernel(x_ref, wt_ref, b_ref, o_ref, acc_ref):
    k = pl.program_id(2)

    @pl.when(k == 0)
    def _init():
        acc_ref[...] = jnp.zeros_like(acc_ref)

    acc_ref[...] += jnp.dot(x_ref[...], wt_ref[...],
                            preferred_element_type=jnp.float32)

    @pl.when(k == pl.num_programs(2) - 1)
    def _finalize():
        # Bias add stays in f32 (v5e VPU has no bf16 ALU); single cast on store.
        o_ref[...] = (acc_ref[...] + b_ref[...]).astype(o_ref.dtype)


def net_g_forward(x, wt, bias, *, tm=256, tn=256, tk=256, compute_dtype=None):
    """out = x @ wt + bias   (== nn.Linear forward with PyTorch weight = wt.T).

    x:    (B, num_class)        wt: (num_class, dim)  compute layout
    bias: (dim,) or (1, dim)    returns (B, dim) in x's dtype
    """
    M, K = x.shape
    Kw, N = wt.shape
    assert Kw == K, f"weight/input mismatch: {wt.shape} vs {x.shape}"
    out_dtype = x.dtype

    b2 = jnp.asarray(bias, jnp.float32).reshape(1, N)
    if compute_dtype is not None:            # e.g. bf16 operands, f32 accumulation
        x = x.astype(compute_dtype)
        wt = wt.astype(compute_dtype)

    footprint = (M * K + K * N + M * N) * 4
    if footprint <= _SINGLE_BLOCK_MAX_BYTES:
        # Whole problem in one VMEM block: no grid, no per-step bookkeeping.
        # (Output last dim may be < 128 here -> masked store; irrelevant at
        #  this size. Real models should keep dim a multiple of 128.)
        return pl.pallas_call(
            _single_block_kernel,
            out_shape=jax.ShapeDtypeStruct((M, N), out_dtype),
            in_specs=[
                pl.BlockSpec(memory_space=pltpu.MemorySpace.VMEM),
                pl.BlockSpec(memory_space=pltpu.MemorySpace.VMEM),
                pl.BlockSpec(memory_space=pltpu.MemorySpace.VMEM),
            ],
            out_specs=pl.BlockSpec(memory_space=pltpu.MemorySpace.VMEM),
        )(x, wt, b2)

    # ---- tiled path ----
    # M rides sublanes (x8); K/N ride lanes (x128). 256 defaults match the
    # v6e/v7x 256x256 MXU and are 128-multiples for v5e's 128x128 MXU.
    tm = min(tm, _round_up(M, 8))
    tn = min(tn, _round_up(N, 128))
    tk = min(tk, _round_up(K, 128))
    Mp, Kp, Np = _round_up(M, tm), _round_up(K, tk), _round_up(N, tn)

    xp = x if (Mp, Kp) == (M, K) else jnp.pad(x, ((0, Mp - M), (0, Kp - K)))
    wtp = wt if (Kp, Np) == (K, N) else jnp.pad(wt, ((0, Kp - K), (0, Np - N)))
    bp = b2 if Np == N else jnp.pad(b2, ((0, 0), (0, Np - N)))

    n_k_steps = Kp // tk
    common = dict(
        out_shape=jax.ShapeDtypeStruct((Mp, Np), out_dtype),
        compiler_params=pltpu.CompilerParams(
            # M/N parallel -> v7x's 2 TensorCores each take half the grid;
            # K (when present) is the carried reduction -> arbitrary.
            dimension_semantics=(("parallel", "parallel", "arbitrary")
                                 if n_k_steps > 1 else ("parallel", "parallel")),
            # Explicit budget: double-buffered 256-tiles need only a few MiB;
            # stays well inside v7x's 64 MiB physical VMEM.
            vmem_limit_bytes=32 * 1024 * 1024,
        ),
    )

    if n_k_steps == 1:
        # K fits in one tile: scratch-free kernel, direct store per (M, N) tile.
        out = pl.pallas_call(
            _tiled_linear_single_k_kernel,
            grid=(Mp // tm, Np // tn),
            in_specs=[
                pl.BlockSpec((tm, tk), lambda i, j: (i, 0)),
                pl.BlockSpec((tk, tn), lambda i, j: (0, j)),
                pl.BlockSpec((1, tn), lambda i, j: (0, j)),
            ],
            out_specs=pl.BlockSpec((tm, tn), lambda i, j: (i, j)),
            **common,
        )(xp, wtp, bp)
    else:
        out = pl.pallas_call(
            _tiled_linear_kernel,
            grid=(Mp // tm, Np // tn, n_k_steps),     # reduction axis (K) last
            in_specs=[
                pl.BlockSpec((tm, tk), lambda i, j, k: (i, k)),
                pl.BlockSpec((tk, tn), lambda i, j, k: (k, j)),
                pl.BlockSpec((1, tn), lambda i, j, k: (0, j)),
            ],
            out_specs=pl.BlockSpec((tm, tn), lambda i, j, k: (i, j)),
            scratch_shapes=[pltpu.VMEM((tm, tn), jnp.float32)],
            **common,
        )(xp, wtp, bp)

    if (Mp, Np) != (M, N):
        out = out[:M, :N]
    return out


def init_net_g_params(key, num_class=2, dim=10):
    """nn.Linear(num_class, dim)-style init (uniform +/- 1/sqrt(fan_in)), with
    the weight stored directly in (num_class, dim) compute layout (transposed
    once at init time, never per forward call)."""
    kw, kb = jax.random.split(key)
    bound = 1.0 / jnp.sqrt(jnp.float32(num_class))
    wt = jax.random.uniform(kw, (num_class, dim), jnp.float32,
                            minval=-bound, maxval=bound)
    bias = jax.random.uniform(kb, (dim,), jnp.float32,
                              minval=-bound, maxval=bound)
    return wt, bias


if __name__ == "__main__":
    key = jax.random.PRNGKey(0)
    k_x, k_p, k_x2, k_p2 = jax.random.split(key, 4)

    # --- Net_g default shapes: nn.Linear(num_class=2, dim=10), batch=8 -------
    num_class, dim, batch = 2, 10, 8
    x = jax.random.normal(k_x, (batch, num_class), jnp.float32)
    wt, bias = init_net_g_params(k_p, num_class=num_class, dim=dim)

    out = jax.block_until_ready(net_g_forward(x, wt, bias))
    ref = jnp.dot(x, wt, precision=jax.lax.Precision.HIGHEST) + bias
    assert out.shape == (batch, dim)
    assert jnp.allclose(out, ref, atol=1e-4, rtol=1e-4)

    # --- larger shapes exercising the tiled MXU path (+ padding/slicing,
    #     multi-K-step accumulator) ------------------------------------------
    B2, K2, N2 = 500, 384, 520
    x2 = jax.random.normal(k_x2, (B2, K2), jnp.float32)
    wt2, bias2 = init_net_g_params(k_p2, num_class=K2, dim=N2)

    out2 = jax.block_until_ready(net_g_forward(x2, wt2, bias2))
    ref2 = jnp.dot(x2, wt2, precision=jax.lax.Precision.HIGHEST) + bias2
    assert out2.shape == (B2, N2)
    assert jnp.allclose(out2, ref2, atol=1e-3, rtol=1e-3)

    # --- single-K-step tiled path (no scratch accumulator) -------------------
    B3, K3, N3 = 512, 256, 512
    x3 = jax.random.normal(k_x, (B3, K3), jnp.float32)
    wt3, bias3 = init_net_g_params(k_p, num_class=K3, dim=N3)
    out3 = jax.block_until_ready(net_g_forward(x3, wt3, bias3))
    ref3 = jnp.dot(x3, wt3, precision=jax.lax.Precision.HIGHEST) + bias3
    assert jnp.allclose(out3, ref3, atol=1e-3, rtol=1e-3)

    # --- optional bf16 operands (v6e/v7x MXU-friendly), f32 accumulation -----
    out4 = jax.block_until_ready(
        net_g_forward(x2, wt2, bias2, compute_dtype=jnp.bfloat16))
    assert jnp.allclose(out4, ref2, atol=5e-2, rtol=5e-2)

    print("KERNEL_OK")
</pallas_src>

<mosaic_0001>
module attributes {stable_mosaic.version = 11 : i64} {
  func.func @_single_block_kernel(%arg0: memref<8x2xf32, #tpu.memory_space<vmem>>, %arg1: memref<2x10xf32, #tpu.memory_space<vmem>>, %arg2: memref<1x10xf32, #tpu.memory_space<vmem>>, %arg3: memref<8x10xf32, #tpu.memory_space<vmem>>) attributes {dimension_semantics = [], scalar_prefetch = 0 : i64, scratch_operands = 0 : i64, tpu.core_type = #tpu.core_type<tc>} {
    %c0 = arith.constant 0 : index
    %c0_0 = arith.constant 0 : index
    %0 = vector.load %arg0[%c0, %c0_0] : memref<8x2xf32, #tpu.memory_space<vmem>>, vector<8x2xf32>
    %c0_1 = arith.constant 0 : index
    %c0_2 = arith.constant 0 : index
    %1 = vector.load %arg1[%c0_1, %c0_2] : memref<2x10xf32, #tpu.memory_space<vmem>>, vector<2x10xf32>
    %c0_3 = arith.constant 0 : index
    %c0_4 = arith.constant 0 : index
    %2 = vector.load %arg2[%c0_3, %c0_4] : memref<1x10xf32, #tpu.memory_space<vmem>>, vector<1x10xf32>
    %cst = arith.constant 0.000000e+00 : f32
    %3 = vector.broadcast %cst : f32 to vector<8x10xf32>
    %4 = vector.broadcast %2 : vector<1x10xf32> to vector<8x10xf32>
    %5 = arith.addf %3, %4 : vector<8x10xf32>
    %6 = vector.extract_strided_slice %0 {offsets = [0, 0], sizes = [8, 1], strides = [1, 1]} : vector<8x2xf32> to vector<8x1xf32>
    %7 = vector.extract_strided_slice %1 {offsets = [0, 0], sizes = [1, 10], strides = [1, 1]} : vector<2x10xf32> to vector<1x10xf32>
    %8 = vector.broadcast %6 : vector<8x1xf32> to vector<8x10xf32>
    %9 = vector.broadcast %7 : vector<1x10xf32> to vector<8x10xf32>
    %10 = arith.mulf %8, %9 : vector<8x10xf32>
    %11 = arith.addf %5, %10 : vector<8x10xf32>
    %12 = vector.extract_strided_slice %0 {offsets = [0, 1], sizes = [8, 1], strides = [1, 1]} : vector<8x2xf32> to vector<8x1xf32>
    %13 = vector.extract_strided_slice %1 {offsets = [1, 0], sizes = [1, 10], strides = [1, 1]} : vector<2x10xf32> to vector<1x10xf32>
    %14 = vector.broadcast %12 : vector<8x1xf32> to vector<8x10xf32>
    %15 = vector.broadcast %13 : vector<1x10xf32> to vector<8x10xf32>
    %16 = arith.mulf %14, %15 : vector<8x10xf32>
    %17 = arith.addf %11, %16 : vector<8x10xf32>
    %c0_5 = arith.constant 0 : index
    %c0_6 = arith.constant 0 : index
    %18 = vector.load %arg3[%c0_5, %c0_6] : memref<8x10xf32, #tpu.memory_space<vmem>>, vector<8x10xf32>
    tpu.vector_store %arg3[%c0_5, %c0_6], %17 {strides = array<i32>} : memref<8x10xf32, #tpu.memory_space<vmem>>, vector<8x10xf32>,
    return
  }
}

</mosaic_0001>

<bundles_post_ra>
// kernel: tpu_custom_call.1
= control target key start
LH: loop header
LB: loop body
LE: loop exit
PB: predicated region body
PF: predicated region fallthrough
CT: control target
= control target key end

     0   :  { %v87_v1 = vmov 0   ;;  %s122_s0 = inlined_call_operand.vmem [shape: f32[8,2], index: 0, kind: input, shape index: {}]   ;;  %s123_s1 = inlined_call_operand.vmem [shape: f32[2,10], index: 1, kind: input, shape index: {}]   ;;  %s124_s2 = inlined_call_operand.vmem [shape: f32[1,10], index: 2, kind: input, shape index: {}]   ;;  %s125_s3 = inlined_call_operand.hbm [shape: f32[8,10], index: 3, kind: output, shape index: {}]  }
   0x1   :  { %v15_v0 = vld [vmem:[%s122_s0] sm:$0xff]  ;;  %58 = vset.pattern.permute.xlu0 %v87_v1 }
   0x2   :  { %24 = vperm.xlu0 %58, %v15_v0  }
   0x3   :  { %8 = vsyncpa [#allocation3], 0  ;;  %v88_v2 = vmov 1   ;;  %v16_v3 = vld [vmem:[%s123_s1] sm:$0x3]  ;;  %s89_s0 = smov [#allocation2]  }
   0x4   :  { %v27_v5 = vperm.slane %v16_v3, 0  ;;  %v60_v6 = vld [vmem:[%s124_s2] ss:$0 sm:$0xff]  ;;  %v34_v8 = vperm.slane %v16_v3, 1  ;;  %s44_s18 = sshll.u32 %s89_s0, 4  ;;  %s46_s21 = sshll.u32 %s125_s3, 4  ;;  %s45_s18 = int_to_ptr.vmem [resolvable:$true] %s44_s18  ;;  %s47_s21 = int_to_ptr.hbm [resolvable:$true] %s46_s21 }
   0x5   :  { %vm37_vm0 = vcmask 80896  }
   0xa   :  { %59 = vset.pattern.permute.xlu0 %v88_v2 }
   0xb   :  { %31 = vperm.xlu0 %59, %v15_v0  }
  0x74   :  { %v25_v4 = vpop.permute.xlu0 %24 }
  0x75   :  { %v28_v7 = vmul.f32 %v27_v5, %v25_v4 }
  0x77   :  { %v29_v10 = vadd.f32 %v60_v6, %v28_v7 }
  0x7d   :  { %v32_v9 = vpop.permute.xlu0 %31 }
  0x7e   :  { %v35_v11 = vmul.f32 %v34_v8, %v32_v9 }
  0x80   :  { %v36_v12 = vadd.f32 %v35_v11, %v29_v10 }
  0x82   :  { %38 = vst.msk [vmem:[#allocation2] sm:$0xff] %vm37_vm0, %v36_v12 }
  0x83   :  { %49 = dma.vmem_to_hbm [thread:$0]  %s45_s18, 128, %s47_s21, [#allocation3]  }
  0x84   :  { %85 = dma.done.wait [#allocation3], 128  }
  0x85   :  { %86 = vsyncadd [#allocation3], 4294967168 }
  0x86   :  { %54 = vsyncpa [#allocation3], 1 }

</bundles_post_ra>
